<compile_context>
chip_gen: v7x
topology: tpu7x:2x2x1
jax: 0.10.0
libtpu: 0.0.40
codegen_flags: <defaults>
</compile_context>

<pallas_src>
import functools

import jax
import jax.numpy as jnp
from jax import lax
from jax.experimental import pallas as pl
from jax.experimental.pallas import tpu as pltpu


_VMEM_BUDGET_BYTES = 24 * 1024 * 1024   # working-set budget (v7x has 64 MiB physical)
_VMEM_LIMIT_BYTES = 48 * 1024 * 1024    # explicit scoped-VMEM limit (< v7x physical)


def _round_up(x, m):
    return ((x + m - 1) // m) * m


def _largest_divisor_leq(n, cap):
    cap = max(1, min(n, cap))
    for d in range(cap, 0, -1):
        if n % d == 0:
            return d
    return 1


def _default_block_b(B, nx):
    """VMEM-budgeted batch tile.

    Counts ALL live buffers: 3 pipelined arrays x 2 buffers + 2 in-kernel
    intermediates (atp/pa), each block_b x (sublane/lane-padded) tile bytes.
    ~0.5-2 MiB operand blocks already reach ~85% of the HBM roofline.
    """
    per_system = _round_up(nx, 8) * _round_up(nx, 128) * 4      # f32, lane-padded
    live_buffers = 3 * 2 + 2
    cap = max(1, _VMEM_BUDGET_BYTES // (live_buffers * per_system))
    cap = min(cap, 512)
    bb = _largest_divisor_leq(B, cap)
    # Keep grid length >= 2 when B allows it so the "parallel" axis actually
    # feeds both TensorCores on v7x (costs one ~0.35us step elsewhere).
    if bb == B and B % 2 == 0:
        bb = B // 2
    return bb


# --------------------------------------------------------------------------- #
# Standard-layout kernel: (B, nx, nx) systems.
# --------------------------------------------------------------------------- #
def _lmi_kernel(alpha_ref, a_ref, p_ref, m_ref, *, symmetric_p):
    """One grid step: a tile of `block_b` independent (nx, nx) systems."""
    alpha = alpha_ref[0]                       # f32 scalar from SMEM
    a = a_ref[...]                             # (block_b, nx, nx)
    p = p_ref[...]                             # (block_b, nx, nx)

    # (P @ A)[b,i,k] = sum_j P[b,i,j] * A[b,j,k]
    pa = lax.dot_general(
        p, a,
        dimension_numbers=(((2,), (1,)), ((0,), (0,))),
        preferred_element_type=jnp.float32)

    if symmetric_p:
        # P = P^T  =>  A^T P = (P A)^T.  One matmul instead of two; the
        # transpose goes to the XLU, a slot this kernel otherwise leaves idle.
        atp = jnp.swapaxes(pa, -1, -2)
    else:
        # (A^T @ P)[b,i,k] = sum_j A[b,j,i] * P[b,j,k] -- contract A's row axis
        # directly; no materialized transpose of A.
        # TODO(synk): verify via pl.lower_as_mlir that Mosaic does not insert a
        # hidden relayout for this non-minor contraction; if it does, feed A
        # pre-transposed from the wrapper.
        atp = lax.dot_general(
            a, p,
            dimension_numbers=(((1,), (1,)), ((0,), (0,))),
            preferred_element_type=jnp.float32)

    # M = -(A^T P + P A + 2*alpha*P)   (VPU elementwise, f32 epilogue)
    m_ref[...] = -(atp + pa + 2.0 * alpha * p.astype(jnp.float32))


def lmi_decay_rate_forward(A, P, alpha, *, block_b=None,
                           assume_symmetric_P=False,
                           compute_dtype=jnp.float32):
    """Pallas implementation of LMI_decay_rate.forward().

    Accepts a single (nx, nx) pair or a batch (B, nx, nx) of pairs.
    Pure / jit-compatible: the SPD guard of the original module is eager-only
    (see `check_p_is_sdp`).

    assume_symmetric_P: use A^T P = (P A)^T (exact only when P is symmetric,
      which the SDP solve guarantees) -> one matmul instead of two.
    compute_dtype: dtype of the matmul operands (bf16 halves HBM read traffic
      and doubles MXU rate); accumulation/epilogue/output stay float32.
    """
    squeeze = A.ndim == 2
    if squeeze:
        A = A[None]
        P = P[None]
    B, nx, _ = A.shape
    assert A.shape == (B, nx, nx) and P.shape == (B, nx, nx)

    if block_b is None:
        block_b = _default_block_b(B, nx)
    assert B % block_b == 0
    grid = (B // block_b,)

    alpha_arr = jnp.asarray(alpha, jnp.float32).reshape((1,))
    kernel = functools.partial(_lmi_kernel, symmetric_p=assume_symmetric_P)

    out = pl.pallas_call(
        kernel,
        out_shape=jax.ShapeDtypeStruct((B, nx, nx), jnp.float32),
        grid=grid,
        in_specs=[
            pl.BlockSpec(memory_space=pltpu.MemorySpace.SMEM),      # alpha (1,)
            pl.BlockSpec((block_b, nx, nx), lambda b: (b, 0, 0)),   # A
            pl.BlockSpec((block_b, nx, nx), lambda b: (b, 0, 0)),   # P
        ],
        out_specs=pl.BlockSpec((block_b, nx, nx), lambda b: (b, 0, 0)),
        compiler_params=pltpu.CompilerParams(
            dimension_semantics=("parallel",),          # both TCs on v7x
            vmem_limit_bytes=_VMEM_LIMIT_BYTES),
    )(alpha_arr, A.astype(compute_dtype), P.astype(compute_dtype))

    return out[0] if squeeze else out


# --------------------------------------------------------------------------- #
# Lane-dense packed kernel: `group` systems packed along the lane (last) axis.
# --------------------------------------------------------------------------- #
def pack_systems(X, group):
    """(B, nx, nx) -> (B//group, nx, group*nx): lane block g holds system g."""
    B, nx, _ = X.shape
    assert B % group == 0
    Xg = X.reshape(B // group, group, nx, nx)
    return jnp.swapaxes(Xg, 1, 2).reshape(B // group, nx, group * nx)


def unpack_systems(Xp, group):
    """Inverse of pack_systems."""
    Bg, nx, L = Xp.shape
    assert L == group * nx
    return jnp.swapaxes(Xp.reshape(Bg, nx, group, nx), 1, 2).reshape(
        Bg * group, nx, nx)


def _lmi_packed_kernel(alpha_ref, a_ref, p_ref, m_ref, *, nx):
    """Lane-dense step: (block_groups, nx, group*nx) tiles, symmetric P.

    cross[b, ga*nx+i, gp*nx+k] = (A_ga^T P_gp)[i,k]; its block-diagonal holds
    the per-system A^T P, and (for symmetric P) the transposed block-diagonal
    holds the per-system P A.  Everything (loads, matmul output, stores) is
    128-lane dense.
    """
    alpha = alpha_ref[0]
    a = a_ref[...]                              # (bb, nx, L)
    p = p_ref[...]                              # (bb, nx, L)
    L = a.shape[-1]
    group = L // nx

    cross = lax.dot_general(                    # (bb, L, L)
        a, p,
        dimension_numbers=(((1,), (1,)), ((0,), (0,))),
        preferred_element_type=jnp.float32)
    cross_t = jnp.swapaxes(cross, -1, -2)       # XLU transpose

    # Keep only the per-system (block-diagonal) part of A^T P + P A.
    row_blk = lax.broadcasted_iota(jnp.int32, (L, L), 0) // nx
    col_blk = lax.broadcasted_iota(jnp.int32, (L, L), 1) // nx
    diag = jnp.where(row_blk == col_blk, cross + cross_t, 0.0)

    # Block-row g has its only nonzero block in lane block g, so summing the
    # block-rows yields the lane-packed per-system results (static 8-aligned
    # sublane slices -> no relayout).
    acc = diag[:, 0:nx, :]
    for g in range(1, group):
        acc = acc + diag[:, g * nx:(g + 1) * nx, :]

    m_ref[...] = -(acc + 2.0 * alpha * p.astype(jnp.float32))


def lmi_decay_rate_forward_packed(A_pk, P_pk, alpha, nx, *, block_groups=None,
                                  compute_dtype=jnp.float32):
    """Lane-dense LMI forward on lane-packed systems.  Requires symmetric P."""
    Bg, nxr, L = A_pk.shape
    assert nxr == nx and L % nx == 0 and P_pk.shape == A_pk.shape

    if block_groups is None:
        per_group = (3 * 2 * _round_up(nx, 8) * L + 3 * L * L) * 4
        cap = max(1, min(64, _VMEM_BUDGET_BYTES // per_group))
        block_groups = _largest_divisor_leq(Bg, cap)
        if block_groups == Bg and Bg % 2 == 0:
            block_groups = Bg // 2              # grid >= 2 for v7x's two TCs
    assert Bg % block_groups == 0
    grid = (Bg // block_groups,)

    alpha_arr = jnp.asarray(alpha, jnp.float32).reshape((1,))
    kernel = functools.partial(_lmi_packed_kernel, nx=nx)

    return pl.pallas_call(
        kernel,
        out_shape=jax.ShapeDtypeStruct((Bg, nx, L), jnp.float32),
        grid=grid,
        in_specs=[
            pl.BlockSpec(memory_space=pltpu.MemorySpace.SMEM),          # alpha
            pl.BlockSpec((block_groups, nx, L), lambda b: (b, 0, 0)),   # A_pk
            pl.BlockSpec((block_groups, nx, L), lambda b: (b, 0, 0)),   # P_pk
        ],
        out_specs=pl.BlockSpec((block_groups, nx, L), lambda b: (b, 0, 0)),
        compiler_params=pltpu.CompilerParams(
            dimension_semantics=("parallel",),
            vmem_limit_bytes=_VMEM_LIMIT_BYTES),
    )(alpha_arr, A_pk.astype(compute_dtype), P_pk.astype(compute_dtype))


def check_p_is_sdp(P):
    """Eager-only SPD guard matching the torch.linalg.eig check in forward().

    Deliberately kept OUT of the jittable hot path: it requires a device->host
    sync and would raise under jax.jit.
    """
    # TODO(synk): torch.linalg.eig (general/complex) has no Pallas/TPU
    # equivalent; eigvalsh on the symmetrized P matches for the symmetric P
    # produced by the SDP solve.
    P = jnp.asarray(P, jnp.float32)
    if P.ndim == 2:
        P = P[None]
    eig_val = jnp.linalg.eigvalsh(0.5 * (P + jnp.swapaxes(P, -1, -2)))
    if not bool(jnp.all(eig_val > 0)):
        raise AssertionError("P is not SDP")


if __name__ == "__main__":
    nx = 32          # linear-module state dimension
    batch = 8        # number of (A, P) systems batched through one pallas_call
    alpha = 0.1      # decay rate

    key = jax.random.PRNGKey(0)
    k_a, k_p = jax.random.split(key)

    # A: the linear module's state matrices.
    A = jax.random.normal(k_a, (batch, nx, nx), dtype=jnp.float32) * 0.1

    # P: deterministic symmetric positive-definite stand-ins for the LMI
    # solver's solution.
    # TODO(synk): the MOSEK SDP solve in solve_lmi() has no Pallas equivalent.
    Bm = jax.random.normal(k_p, (batch, nx, nx), dtype=jnp.float32)
    P = jnp.einsum("bij,bkj->bik", Bm, Bm) / nx + 1e-3 * jnp.eye(nx, dtype=jnp.float32)
    P = 0.5 * (P + jnp.swapaxes(P, -1, -2))     # enforce exact symmetry

    # One-time SPD guard, kept off the jitted hot path.
    check_p_is_sdp(P)

    # High-precision plain-JAX reference of the forward pass.
    hi = jax.lax.Precision.HIGHEST
    At = jnp.swapaxes(A, -1, -2)
    M_ref = -(jnp.einsum("bij,bjk->bik", At, P, precision=hi)
              + jnp.einsum("bij,bjk->bik", P, A, precision=hi)
              + 2.0 * alpha * P)

    fwd = jax.jit(lmi_decay_rate_forward,
                  static_argnames=("block_b", "assume_symmetric_P", "compute_dtype"))
    fwd_packed = jax.jit(lmi_decay_rate_forward_packed,
                         static_argnames=("nx", "block_groups", "compute_dtype"))

    # 1) Default path: VMEM-budgeted block_b (grid=(2,) at B=8 -> both TCs on v7x).
    M = fwd(A, P, alpha)
    jax.block_until_ready(M)
    assert jnp.allclose(M, M_ref, atol=1e-3, rtol=1e-3), "batched mismatch"

    # 2) Single-system call (matches the module's forward() exactly).
    M0 = fwd(A[0], P[0], alpha)
    jax.block_until_ready(M0)
    assert jnp.allclose(M0, M_ref[0], atol=1e-3, rtol=1e-3), "single mismatch"

    # 3) Symmetric-P fast path: one matmul + XLU transpose.
    M_sym = fwd(A, P, alpha, assume_symmetric_P=True)
    jax.block_until_ready(M_sym)
    assert jnp.allclose(M_sym, M_ref, atol=1e-3, rtol=1e-3), "symmetric-path mismatch"

    # 4) Lane-dense packed path: 4 systems per 128 lanes at nx=32.
    group = max(1, 128 // nx)
    A_pk = pack_systems(A, group)
    P_pk = pack_systems(P, group)
    M_pk = fwd_packed(A_pk, P_pk, alpha, nx=nx)
    jax.block_until_ready(M_pk)
    assert jnp.allclose(unpack_systems(M_pk, group), M_ref,
                        atol=1e-3, rtol=1e-3), "packed mismatch"

    # 5) bf16-operand option (memory-bound kernel: halves HBM read traffic).
    M_bf16 = fwd(A, P, alpha, compute_dtype=jnp.bfloat16)
    jax.block_until_ready(M_bf16)
    assert jnp.allclose(M_bf16, M_ref, atol=5e-2, rtol=5e-2), "bf16 mismatch"

    print("KERNEL_OK")
</pallas_src>

<mosaic_0001>
module attributes {stable_mosaic.version = 11 : i64} {
  func.func @_lmi_kernel(%arg0: i32, %arg1: memref<1xf32, #tpu.memory_space<smem>>, %arg2: memref<4x32x32xf32, #tpu.memory_space<vmem>>, %arg3: memref<4x32x32xf32, #tpu.memory_space<vmem>>, %arg4: memref<4x32x32xf32, #tpu.memory_space<vmem>>) attributes {dimension_semantics = [#tpu.dimension_semantics<parallel>], iteration_bounds = array<i64: 2>, scalar_prefetch = 0 : i64, scratch_operands = 0 : i64, tpu.core_type = #tpu.core_type<tc>, window_params = [{transform_indices = @transform_0, window_bounds = array<i64: 1>}, {transform_indices = @transform_1, window_bounds = array<i64: 4, 32, 32>}, {transform_indices = @transform_2, window_bounds = array<i64: 4, 32, 32>}, {transform_indices = @transform_3, window_bounds = array<i64: 4, 32, 32>}]} {
    %c0 = arith.constant 0 : index
    %0 = memref.load %arg1[%c0] : memref<1xf32, #tpu.memory_space<smem>>
    %c0_0 = arith.constant 0 : index
    %c0_1 = arith.constant 0 : index
    %c0_2 = arith.constant 0 : index
    %1 = vector.load %arg2[%c0_0, %c0_1, %c0_2] : memref<4x32x32xf32, #tpu.memory_space<vmem>>, vector<4x32x32xf32>
    %c0_3 = arith.constant 0 : index
    %c0_4 = arith.constant 0 : index
    %c0_5 = arith.constant 0 : index
    %2 = vector.load %arg3[%c0_3, %c0_4, %c0_5] : memref<4x32x32xf32, #tpu.memory_space<vmem>>, vector<4x32x32xf32>
    %cst = arith.constant dense<0.000000e+00> : vector<4x32x32xf32>
    %3 = tpu.matmul %2, %1, %cst {dimension_numbers = #tpu.dot_dimension_numbers<[2], [1], [1], [2], [0, 0, 0, 1, 1, 2], [0], [0]>} : vector<4x32x32xf32>, vector<4x32x32xf32>, vector<4x32x32xf32> -> vector<4x32x32xf32>
    %cst_6 = arith.constant dense<0.000000e+00> : vector<4x32x32xf32>
    %4 = tpu.matmul %1, %2, %cst_6 {dimension_numbers = #tpu.dot_dimension_numbers<[1], [1], [2], [2], [0, 0, 0, 2, 1, 2], [0], [0]>} : vector<4x32x32xf32>, vector<4x32x32xf32>, vector<4x32x32xf32> -> vector<4x32x32xf32>
    %5 = arith.addf %4, %3 : vector<4x32x32xf32>
    %cst_7 = arith.constant 2.000000e+00 : f32
    %6 = arith.mulf %cst_7, %0 : f32
    %7 = vector.broadcast %6 : f32 to vector<4x32x32xf32>
    %8 = arith.mulf %7, %2 : vector<4x32x32xf32>
    %9 = arith.addf %5, %8 : vector<4x32x32xf32>
    %cst_8 = arith.constant 0.000000e+00 : f32
    %10 = vector.broadcast %cst_8 : f32 to vector<4x32x32xf32>
    %11 = arith.subf %10, %9 : vector<4x32x32xf32>
    %c0_9 = arith.constant 0 : index
    %c0_10 = arith.constant 0 : index
    %c0_11 = arith.constant 0 : index
    %12 = vector.load %arg4[%c0_9, %c0_10, %c0_11] : memref<4x32x32xf32, #tpu.memory_space<vmem>>, vector<4x32x32xf32>
    tpu.vector_store %arg4[%c0_9, %c0_10, %c0_11], %11 {strides = array<i32>} : memref<4x32x32xf32, #tpu.memory_space<vmem>>, vector<4x32x32xf32>,
    return
  }
  func.func @transform_0(%arg0: i32) -> i32 {
    %c0_i32 = arith.constant 0 : i32
    %c0_i32_0 = arith.constant 0 : i32
    return %c0_i32 : i32
  }
  func.func @transform_1(%arg0: i32) -> (i32, i32, i32) {
    %c0_i32 = arith.constant 0 : i32
    %c0_i32_0 = arith.constant 0 : i32
    %c0_i32_1 = arith.constant 0 : i32
    return %arg0, %c0_i32, %c0_i32_0 : i32, i32, i32
  }
  func.func @transform_2(%arg0: i32) -> (i32, i32, i32) {
    %c0_i32 = arith.constant 0 : i32
    %c0_i32_0 = arith.constant 0 : i32
    %c0_i32_1 = arith.constant 0 : i32
    return %arg0, %c0_i32, %c0_i32_0 : i32, i32, i32
  }
  func.func @transform_3(%arg0: i32) -> (i32, i32, i32) {
    %c0_i32 = arith.constant 0 : i32
    %c0_i32_0 = arith.constant 0 : i32
    %c0_i32_1 = arith.constant 0 : i32
    return %arg0, %c0_i32, %c0_i32_0 : i32, i32, i32
  }
}

</mosaic_0001>

<bundles_post_ra>
// kernel: lmi_decay_rate_forward.1
= control target key start
LH: loop header
LB: loop body
LE: loop exit
PB: predicated region body
PF: predicated region fallthrough
CT: control target
= control target key end

     0   :  { %s2312_s0 = inlined_call_operand.<no memory space> [shape: f32[1], index: 0, kind: input, shape index: {}]   ;;  %s2313_s1 = inlined_call_operand.hbm [shape: f32[8,32,32], index: 1, kind: input, shape index: {}]   ;;  %s2314_s2 = inlined_call_operand.hbm [shape: f32[8,32,32], index: 2, kind: input, shape index: {}]   ;;  %s2315_s3 = inlined_call_operand.hbm [shape: f32[8,32,32], index: 3, kind: output, shape index: {}]  }
   0x1   :  { %8 = sst [smem:[#allocation2]] %s2312_s0 }
   0x2   :  { %9 = vsyncpa [#allocation4], 0 }
   0x3   :  { %11 = vsyncpa [#allocation4 + $0x1], 0 }
   0x4   :  { %12 = vsyncpa [#allocation7], 0 }
   0x5   :  { %14 = vsyncpa [#allocation7 + $0x1], 0 }
   0x6   :  { %15 = vsyncpa [#allocation5], 0 }
   0x7   :  { %17 = vsyncpa [#allocation5 + $0x1], 0  ;;  %s1883_s14 = smov 0   ;;  %s1885_s15 = smov 0  }
   0x8   :  { %s1887_s16 = smov 0   ;;  %s1889_s17 = smov 0  }
   0x9 LB: > { %s1904_s0 = sadd.s32 4294967295, %s1851_s17   ;;  %s1350_s18 = sadd.s32 4294967294, %s1851_s17   ;;  %s1851_s17 = sphi %s1889_s17, %s2331_s17   ;;  %s1847_s16 = sphi %s1887_s16, %s2330_s16   ;;  %s1843_s15 = sphi %s1885_s15, %s2329_s15   ;;  %s1839_s14 = sphi %s1883_s14, %s2328_s14  }
   0xa   : > { %s1908_s19 = sadd.s32 1, %s1851_s17   ;;  %s51_s20 = sadd.s32 1, %s1847_s16 }
   0xb   : > { %s48_s21 = ssub.s32 %s1851_s17, %s1908_s19  ;;  %p58_p0 = scmp.ne.s32.totalorder %s1847_s16, %s1843_s15 }
   0xc   : > { %p49_p1 = scmp.eq.s32.totalorder %s48_s21, 0  ;;  %p59_p2 = scmp.eq.s32.totalorder %s1851_s17, 0 }
   0xd   : > { %p64_p3 = scmp.ne.s32.totalorder %s1843_s15, %s1839_s14  ;;  %p65_p4 = scmp.eq.s32.totalorder %s1904_s0, 0 }
   0xe   : > { %s1920_s22 = scalar_select %p49_p1, %s1847_s16, %s51_s20  }
   0xf   : > { %p1922_p5 = por %p59_p2, %p58_p0  ;;  %p1926_p6 = por %p65_p4, %p64_p3 }
  0x10   : > { %p114_p7 = scmp.eq.s32.totalorder %s1904_s0, 1  ;;  %p120_p8 = scmp.eq.s32.totalorder %s1350_s18, 1 }
  0x11   : > { %s2319_s24 = scalar_select %p1926_p6, 1, 0 }
  0x12   : > { %p1682_p10 = scmp.lt.s32.totalorder %s1851_s17, 2  ;;  %p1933_p11 = por %p114_p7, %p58_p0 }
  0x13   : > { %p1937_p12 = por %p120_p8, %p64_p3  ;;  %s1942_s27 = sand.u32 1, %s1847_s16  }
  0x14   : > { %s2320_s25 = scalar_select %p1933_p11, 1, 0 }
  0x15   : > { %s2321_s26 = scalar_select %p1937_p12, 1, 0 }
  0x16   : > { %s1404_s28 = sshll.u32 %s1851_s17, 11  ;;  %s1353_s29 = sshll.u32 %s1942_s27, 7 }
  0x17   : > { %s1951_s5 = scalar_lea.hbm %s2313_s1, %s1404_s28  ;;  %s147_s6 = scalar_lea.vmem [#allocation3], %s1353_s29 }
  0x18   : > { %s155_s7 = sshll.u32 %s147_s6, 4  ;;  %p1957_p13 = pnand %p1682_p10, %p1922_p5  ;;  %s1961_s7 = int_to_ptr.vmem [resolvable:$true] %s155_s7 }
  0x19   : > { %s144_s9 = scalar_lea.sflag [#allocation4], %s1942_s27  ;;  %s1721_s10 = scalar_lea.hbm %s1951_s5, 2048 }
  0x1a   : > { %p1722_p0 = scmp.ne.s32.totalorder %s1951_s5, %s1721_s10  ;;  %p1723_p1 = pneg %p1957_p13 }
  0x1b   : > { %s1726_s13 = scalar_lea.hbm %s2313_s1, 4096  ;;  %p1727_p4 = scmp.lt.u32.totalorder %s1951_s5, %s2313_s1 }
  0x1c   : > { %p1724_p2 = pnand %p1723_p1, %p1722_p0  ;;  %p1728_p5 = scmp.lt.u32.totalorder %s1726_s13, %s1721_s10 }
  0x1d   : > { %p1730_p8 = scmp.lt.u32.totalorder %s1721_s10, %s1951_s5 }
  0x1e   : > { %p1725_p3 = pneg %p1724_p2  ;;  %p1729_p7 = por %p1728_p5, %p1727_p4 }
  0x20   : > { %p1731_p10 = por %p1730_p8, %p1729_p7 }
  0x22   : > { %p1732_p9 = pnand %p1731_p10, %p1725_p3 }
  0x24   : > { %1735 = shalt.err (!%p1732_p9)
}
  0x25   : > { %s1736_s21 = scalar_lea.vmem %s1961_s7, 2048  ;;  %s1853_s23 = smov [#allocation3]  }
  0x26   : > { %p1737_p0 = scmp.ne.s32.totalorder %s1961_s7, %s1736_s21  ;;  %s1741_s30 = sshll.u32 %s1853_s23, 4  ;;  %s1742_s30 = int_to_ptr.vmem [resolvable:$false] %s1741_s30 }
  0x27   : > { %s1743_s4 = scalar_lea.vmem %s1742_s30, 4096  ;;  %p1744_p11 = scmp.lt.s32.totalorder %s1961_s7, %s1742_s30 }
  0x28   : > { %p1739_p2 = pnand %p1737_p0, %p1723_p1  ;;  %p1745_p4 = scmp.lt.s32.totalorder %s1743_s4, %s1736_s21 }
  0x2a   : > { %p1740_p12 = pneg %p1739_p2  ;;  %p1746_p5 = por %p1745_p4, %p1744_p11 }
  0x2c   : > { %p1747_p7 = pnand %p1746_p5, %p1740_p12 }
  0x2e   : > { %1750 = shalt.err (!%p1747_p7)
}
  0x2f   : > { %s1854_s6 = smov 128   ;;  %s1855_s10 = smov 8  }
  0x30   : > { %1674 = dma.hbm_to_vmem [thread:$0]  (!%p1957_p13), %s1951_s5, 2048, %s1961_s7, %s144_s9, %s1854_s6, %s1854_s6, %s1855_s10  }
  0x31   : > { %p1361_p9 = scmp.ge.s32.totalorder %s1851_s17, 1  ;;  %p185_p11 = scmp.lt.s32.totalorder %s1851_s17, 3 }
  0x32   : > { %s2005_s18 = scalar_lea.hbm %s2314_s2, %s1404_s28  ;;  %s169_s20 = scalar_lea.vmem [#allocation6], %s1353_s29 }
  0x33   : > { %p1996_p12 = pnand %p1361_p9, %p185_p11  ;;  %s177_s21 = sshll.u32 %s169_s20, 4  ;;  %s2009_s21 = int_to_ptr.vmem [resolvable:$true] %s177_s21 }
  0x34   : > { %s166_s5 = scalar_lea.sflag [#allocation7], %s1942_s27  ;;  %s1751_s7 = scalar_lea.hbm %s2005_s18, 2048 }
  0x35   : > { %p1752_p3 = scmp.ne.s32.totalorder %s2005_s18, %s1751_s7  ;;  %s1756_s28 = scalar_lea.hbm %s2314_s2, 4096 }
  0x36   : > { %p1757_p0 = scmp.lt.u32.totalorder %s2005_s18, %s2314_s2  ;;  %p1758_p2 = scmp.lt.u32.totalorder %s1756_s28, %s1751_s7 }
  0x37   : > { %p1754_p8 = pnand %p1752_p3, %p1723_p1  ;;  %p1760_p5 = scmp.lt.u32.totalorder %s1751_s7, %s2005_s18 }
  0x38   : > { %p1759_p4 = por %p1758_p2, %p1757_p0 }
  0x39   : > { %p1755_p10 = pneg %p1754_p8 }
  0x3a   : > { %p1761_p7 = por %p1760_p5, %p1759_p4 }
  0x3c   : > { %p1762_p9 = pnand %p1761_p7, %p1755_p10 }
  0x3e   : > { %1765 = shalt.err (!%p1762_p9)
}
  0x3f   : > { %s1766_s29 = scalar_lea.vmem %s2009_s21, 2048  ;;  %s1856_s12 = smov [#allocation6]  }
  0x40   : > { %p1767_p11 = scmp.ne.s32.totalorder %s2009_s21, %s1766_s29  ;;  %s1771_s13 = sshll.u32 %s1856_s12, 4  ;;  %s1772_s13 = int_to_ptr.vmem [resolvable:$false] %s1771_s13 }
  0x41   : > { %s1773_s20 = scalar_lea.vmem %s1772_s13, 4096  ;;  %p1774_p6 = scmp.lt.s32.totalorder %s2009_s21, %s1772_s13 }
  0x42   : > { %p1769_p3 = pnand %p1767_p11, %p1723_p1  ;;  %p1775_p0 = scmp.lt.s32.totalorder %s1773_s20, %s1766_s29 }
  0x44   : > { %p1770_p8 = pneg %p1769_p3  ;;  %p1776_p2 = por %p1775_p0, %p1774_p6 }
  0x46   : > { %p1777_p4 = pnand %p1776_p2, %p1770_p8 }
  0x48   : > { %1780 = shalt.err (!%p1777_p4)
}
  0x49   : > { %1677 = dma.hbm_to_vmem [thread:$0]  (!%p1957_p13), %s2005_s18, 2048, %s2009_s21, %s166_s5, %s1854_s6, %s1854_s6, %s1855_s10  }
  0x4a   : > { %189 = sbr.rel (%p1996_p12) target bundleno = 475 (0x1db), region = 32  ;;  %s2043_s7 = sand.u32 (!%p1996_p12), 1, %s1843_s15  }
  0x4b   : > { %s2046_s9 = sshll.u32 (!%p1996_p12), %s2043_s7, 7  ;;  %s192_s8 = scalar_lea.sflag (!%p1996_p12), [#allocation4], %s2043_s7 }
  0x4c   : > { %s2050_s23 = scalar_lea.vmem (!%p1996_p12), [#allocation3], %s2046_s9  ;;  %p2324_p6 = scmp.ne.s32.totalorder (!%p1996_p12), %s2319_s24, 0 }
  0x51   : > { %1826 = dma.done.wait (%p2324_p6), %s192_s8, 2048  }
  0x52   : > { %1828 = vsyncadd (%p2324_p6), %s192_s8, 4294965248  ;;  %s201_s27 = scalar_lea.sflag [#allocation7], %s2043_s7  ;;  %s2058_s6 = scalar_lea.vmem [#allocation6], %s2046_s9 }
  0x53   : > { %1830 = dma.done.wait (%p2324_p6), %s201_s27, 2048  }
  0x54   : > { %1832 = vsyncadd (%p2324_p6), %s201_s27, 4294965248  ;;  %v240_v0 = vld [vmem:[%s2050_s23 + $0x20] sm:$0xff]  ;;  %v241_v2 = vld [vmem:[%s2050_s23 + $0x28] sm:$0xff]  ;;  %vm268_vm0 = vcmask 261120   ;;  %s235_s24 = sld [smem:[#allocation2]]  ;;  %s2203_s11 = scalar_lea.vmem [#allocation8], %s2046_s9 }
  0x55   : > { %v236_v1 = vld [vmem:[%s2050_s23] sm:$0xff]  ;;  %786 = vxpose.xlu1.b32.start [1/4] (short) (narrow) %v240_v0, 32  ;;  %v237_v3 = vld [vmem:[%s2050_s23 + $0x8] sm:$0xff]  ;;  %v242_v4 = vld [vmem:[%s2050_s23 + $0x30] sm:$0xff]  ;;  %v1593_v5 = vpack.c.bf16 %v241_v2, %v240_v0  ;;  %s1408_s18 = sshll.u32 %s1904_s0, 11  ;;  %s1254_s21 = sshll.u32 %s2203_s11, 4  ;;  %s2260_s21 = int_to_ptr.vmem [resolvable:$true] %s1254_s21 }
  0x56   : > { %657 = vxpose.xlu0.b32.start [1/4] (short) (narrow) %v236_v1, 32  ;;  %v238_v6 = vld [vmem:[%s2050_s23 + $0x10] sm:$0xff]  ;;  %v243_v7 = vld [vmem:[%s2050_s23 + $0x38] sm:$0xff]  ;;  %v1585_v9 = vpack.c.bf16 %v237_v3, %v236_v1  ;;  %v248_v12 = vld [vmem:[%s2050_s23 + $0x60] sm:$0xff]  ;;  %s2258_s30 = scalar_lea.hbm %s2315_s3, %s1408_s18  ;;  %s1240_s0 = scalar_lea.sflag [#allocation5], %s2043_s7 }
  0x57   : > { %v239_v8 = vld [vmem:[%s2050_s23 + $0x18] sm:$0xff]  ;;  %v1597_v10 = vpack.c.bf16 %v243_v7, %v242_v4  ;;  %1594 = vmatprep.subr.bf16.mxu1 %v1593_v5  ;;  %v249_v13 = vld [vmem:[%s2050_s23 + $0x68] sm:$0xff]  ;;  %v2075_v14 = vld [vmem:[%s2058_s6] sm:$0xff]  ;;  %s1781_s4 = scalar_lea.vmem %s2260_s21, 2048  ;;  %p2325_p1 = scmp.ne.s32.totalorder %s2320_s25, 0 }
  0x58   : > { %v1589_v11 = vpack.c.bf16 %v239_v8, %v238_v6  ;;  %1586 = vmatprep.subr.bf16.mxu0 %v1585_v9  ;;  %1596 = vmatpush3.bf16.msra.mxu1 %v1593_v5  ;;  %v2078_v15 = vld [vmem:[%s2058_s6 + $0x20] sm:$0xff]  ;;  %v1609_v16 = vpack.c.bf16 %v249_v13, %v248_v12  ;;  %v245_v18 = vld [vmem:[%s2050_s23 + $0x48] sm:$0xff]  ;;  %v250_v21 = vld [vmem:[%s2050_s23 + $0x70] sm:$0xff]  ;;  %p1782_p13 = scmp.ne.s32.totalorder %s2260_s21, %s1781_s4  ;;  %s1857_s29 = smov [#allocation8]  }
  0x59   : > { %787 = vxpose.xlu1.b32.cont [2/4] (short) (narrow) %v241_v2, 32  ;;  %v244_v17 = vld [vmem:[%s2050_s23 + $0x40] sm:$0xff]  ;;  %1588 = vmatpush3.bf16.msra.mxu0 %v1585_v9  ;;  %v2087_v20 = vld [vmem:[%s2058_s6 + $0x28] sm:$0xff]  ;;  %v251_v22 = vld [vmem:[%s2050_s23 + $0x78] sm:$0xff]  ;;  %s1785_s12 = sshll.u32 %s1857_s29, 4  ;;  %s1786_s12 = int_to_ptr.vmem [resolvable:$false] %s1785_s12 }
  0x5a   : > { %658 = vxpose.xlu0.b32.cont [2/4] (short) (narrow) %v237_v3, 32  ;;  %1598 = vmatprep.subr.bf16.mxu1 %v1597_v10  ;;  %v1601_v19 = vpack.c.bf16 %v245_v18, %v244_v17  ;;  %v2092_v23 = vld [vmem:[%s2058_s6 + $0x30] sm:$0xff]  ;;  %v1613_v24 = vpack.c.bf16 %v251_v22, %v250_v21  ;;  %v247_v26 = vld [vmem:[%s2050_s23 + $0x58] sm:$0xff]  ;;  %v2097_v27 = vld [vmem:[%s2058_s6 + $0x8] sm:$0xff]  ;;  %v1625_v37 = vpack.c.bf16 %v2087_v20, %v2078_v15  ;;  %s1173_s10 = smul.f32 2.0, %s235_s24  ;;  %p1783_p12 = pnand %p1782_p13, %p2325_p1 }
  0x5b   : > { %1590 = vmatprep.subr.bf16.mxu0 %v1589_v11  ;;  %1481 = vmatprep.mubr.msk.f32.mxu0 %vm268_vm0, %v2075_v14  ;;  %v246_v25 = vld [vmem:[%s2050_s23 + $0x50] sm:$0xff]  ;;  %v2107_v30 = vld [vmem:[%s2058_s6 + $0x38] sm:$0xff]  ;;  %v2119_v32 = vld [vmem:[%s2058_s6 + $0x40] sm:$0xff]  ;;  %v1617_v33 = vpack.c.bf16 %v2097_v27, %v2075_v14  ;;  %s1787_s13 = scalar_lea.vmem %s1786_s12, 4096  ;;  %p1788_p5 = scmp.lt.s32.totalorder %s2260_s21, %s1786_s12 }
  0x5c   : > { %1600 = vmatpush3.bf16.msra.mxu1 %v1597_v10  ;;  %1495 = vmatprep.mubr.msk.f32.mxu1 %vm268_vm0, %v2078_v15  ;;  %v1605_v28 = vpack.c.bf16 %v247_v26, %v246_v25  ;;  %v2102_v29 = vld [vmem:[%s2058_s6 + $0x10] sm:$0xff]  ;;  %v2114_v31 = vld [vmem:[%s2058_s6 + $0x18] sm:$0xff]  ;;  %v2124_v34 = vld [vmem:[%s2058_s6 + $0x60] sm:$0xff]  ;;  %v1629_v43 = vpack.c.bf16 %v2107_v30, %v2092_v23  ;;  %v2192_v0 = vstv %s1173_s10  ;;  %p1784_p10 = pneg %p1783_p12  ;;  %p1789_p7 = scmp.lt.s32.totalorder %s1787_s13, %s1781_s4 }
  0x5d   : > { %788 = vxpose.xlu1.b32.cont [3/4] (short) (narrow) %v242_v4, 32  ;;  %1592 = vmatpush3.bf16.msra.mxu0 %v1589_v11  ;;  %v2131_v35 = vld [vmem:[%s2058_s6 + $0x48] sm:$0xff]  ;;  %v2141_v38 = vld [vmem:[%s2058_s6 + $0x50] sm:$0xff]  ;;  %v2151_v40 = vld [vmem:[%s2058_s6 + $0x58] sm:$0xff]  ;;  %v1621_v41 = vpack.c.bf16 %v2114_v31, %v2102_v29  ;;  %v1176_v1 = vmul.f32 %v2192_v0, %v2097_v27  ;;  %v1180_v2 = vmul.f32 %v2192_v0, %v2087_v20 }
  0x5e   : > { %659 = vxpose.xlu0.b32.cont [3/4] (short) (narrow) %v238_v6, 32  ;;  %1610 = vmatprep.subr.bf16.mxu1 %v1609_v16  ;;  %v2134_v36 = vld [vmem:[%s2058_s6 + $0x68] sm:$0xff]  ;;  %v2148_v39 = vld [vmem:[%s2058_s6 + $0x70] sm:$0xff]  ;;  %v2158_v42 = vld [vmem:[%s2058_s6 + $0x78] sm:$0xff]  ;;  %v1633_v44 = vpack.c.bf16 %v2131_v35, %v2119_v32  ;;  %v1637_v48 = vpack.c.bf16 %v2151_v40, %v2141_v38  ;;  %v1175_v3 = vmul.f32 %v2192_v0, %v2075_v14  ;;  %p1790_p9 = por %p1789_p7, %p1788_p5 }
  0x5f   : > { %1496 = vmatmul.mubr.msk.f32.vlgmr.msra.gmra.mrb[0].mxu1 %vm268_vm0, %v2087_v20  ;;  %1602 = vmatprep.subr.bf16.mxu0 %v1601_v19  ;;  %v1641_v45 = vpack.c.bf16 %v2134_v36, %v2124_v34  ;;  %v1645_v49 = vpack.c.bf16 %v2158_v42, %v2148_v39  ;;  %v1179_v4 = vmul.f32 %v2192_v0, %v2078_v15 }
  0x60   : > { %1612 = vmatpush3.bf16.msra.mxu1 %v1609_v16  ;;  %1498 = vmatprep.mubr.msk.f32.mxu1 %vm268_vm0, %v2092_v23  ;;  %v1178_v14 = vmul.f32 %v2192_v0, %v2114_v31  ;;  %v1182_v15 = vmul.f32 %v2192_v0, %v2107_v30  ;;  %v1181_v20 = vmul.f32 %v2192_v0, %v2092_v23  ;;  %p1791_p11 = pnand %p1790_p9, %p1784_p10 }
  0x61   : > { %789 = vxpose.xlu1.b32.end [4/4] (short) (narrow) %v243_v7, 32  ;;  %1482 = vmatmul.mubr.msk.f32.vlgmr.msra.gmra.mrb[0].mxu0 %vm268_vm0, %v2097_v27  ;;  %v1184_v23 = vmul.f32 %v2192_v0, %v2131_v35 }
  0x62   : > { %660 = vxpose.xlu0.b32.end [4/4] (short) (narrow) %v239_v8, 32  ;;  %1614 = vmatprep.subr.bf16.mxu1 %v1613_v24 }
  0x63   : > { %1604 = vmatpush3.bf16.msra.mxu0 %v1601_v19  ;;  %1484 = vmatprep.mubr.msk.f32.mxu0 %vm268_vm0, %v2102_v29  ;;  %v1177_v19 = vmul.f32 %v2192_v0, %v2102_v29  ;;  %v1188_v29 = vmul.f32 %v2192_v0, %v2134_v36 }
  0x64   : > { %1499 = vmatmul.mubr.msk.f32.gmra.mrb[2].mxu1 %vm268_vm0, %v2107_v30  ;;  %1606 = vmatprep.subr.bf16.mxu0 %v1605_v28 }
  0x65   : > { %1044 = vxpose.xlu1.b32.start [1/4] (short) (narrow) %v248_v12, 32  ;;  %1485 = vmatmul.mubr.msk.f32.gmra.mrb[2].mxu0 %vm268_vm0, %v2114_v31 }
  0x66   : > { %915 = vxpose.xlu0.b32.start [1/4] (short) (narrow) %v244_v17, 32  ;;  %1616 = vmatpush3.bf16.msra.mxu1 %v1613_v24 }
  0x67   : > { %1608 = vmatpush3.bf16.msra.mxu0 %v1605_v28  ;;  %1509 = vmatprep.mubr.msk.f32.mxu0 %vm268_vm0, %v2119_v32 }
  0x68   : > { %1523 = vmatprep.mubr.msk.f32.mxu1 %vm268_vm0, %v2124_v34  ;;  %1618 = vmatprep.subr.bf16.mxu0 %v1617_v33 }
  0x69   : > { %1045 = vxpose.xlu1.b32.cont [2/4] (short) (narrow) %v249_v13, 32  ;;  %1524 = vmatmul.mubr.msk.f32.vlgmr.msra.gmra.mrb[4].mxu1 %vm268_vm0, %v2134_v36 }
  0x6a   : > { %916 = vxpose.xlu0.b32.cont [2/4] (short) (narrow) %v245_v18, 32  ;;  %1510 = vmatmul.mubr.msk.f32.vlgmr.msra.gmra.mrb[4].mxu0 %vm268_vm0, %v2131_v35 }
  0x6b   : > { %1626 = vmatprep.subr.bf16.mxu1 %v1625_v37  ;;  %1620 = vmatpush3.bf16.msra.mxu0 %v1617_v33 }
  0x6c   : > { %1628 = vmatpush3.bf16.msra.mxu1 %v1625_v37  ;;  %1512 = vmatprep.mubr.msk.f32.mxu0 %vm268_vm0, %v2141_v38 }
  0x6d   : > { %1046 = vxpose.xlu1.b32.cont [3/4] (short) (narrow) %v250_v21, 32  ;;  %1526 = vmatprep.mubr.msk.f32.mxu1 %vm268_vm0, %v2148_v39 }
  0x6e   : > { %917 = vxpose.xlu0.b32.cont [3/4] (short) (narrow) %v246_v25, 32  ;;  %1513 = vmatmul.mubr.msk.f32.gmra.mrb[6].mxu0 %vm268_vm0, %v2151_v40 }
  0x6f   : > { %1527 = vmatmul.mubr.msk.f32.gmra.mrb[6].mxu1 %vm268_vm0, %v2158_v42  ;;  %1622 = vmatprep.subr.bf16.mxu0 %v1621_v41 }
  0x70   : > { %1630 = vmatprep.subr.bf16.mxu1 %v1629_v43  ;;  %1624 = vmatpush3.bf16.msra.mxu0 %v1621_v41 }
  0x71   : > { %1047 = vxpose.xlu1.b32.end [4/4] (short) (narrow) %v251_v22, 32  ;;  %1632 = vmatpush3.bf16.msra.mxu1 %v1629_v43  ;;  %v1183_v43 = vmul.f32 %v2192_v0, %v2119_v32  ;;  %v1186_v32 = vmul.f32 %v2192_v0, %v2151_v40 }
  0x72   : > { %918 = vxpose.xlu0.b32.end [4/4] (short) (narrow) %v247_v26, 32  ;;  %1634 = vmatprep.subr.bf16.mxu0 %v1633_v44 }
  0x73   : > { %1642 = vmatprep.subr.bf16.mxu1 %v1641_v45 }
  0xd5   : > { %v802_v46 = vpop.trf.xlu1 }
  0xd6   : > { %v673_v47 = vpop.trf.xlu0  ;;  %1551 = vmatprep.mubr.msk.f32.mxu1 %vm268_vm0, %v802_v46 }
  0xd7   : > { %1537 = vmatprep.mubr.msk.f32.mxu0 %vm268_vm0, %v673_v47 }
  0xd9   : > { %v803_v50 = vpop.trf.xlu1 }
  0xda   : > { %v674_v51 = vpop.trf.xlu0  ;;  %1552 = vmatmul.mubr.msk.f32.vlgmr.msra.gmra.mrb[0].mxu1 %vm268_vm0, %v803_v50 }
  0xdb   : > { %1538 = vmatmul.mubr.msk.f32.vlgmr.msra.gmra.mrb[0].mxu0 %vm268_vm0, %v674_v51  ;;  %1644 = vmatpush3.bf16.msra.mxu1 %v1641_v45 }
  0xdc   : > { %1636 = vmatpush3.bf16.msra.mxu0 %v1633_v44  ;;  %1646 = vmatprep.subr.bf16.mxu1 %v1645_v49  ;;  %v1187_v44 = vmul.f32 %v2192_v0, %v2124_v34  ;;  %v1190_v34 = vmul.f32 %v2192_v0, %v2158_v42 }
  0xdd   : > { %1638 = vmatprep.subr.bf16.mxu0 %v1637_v48  ;;  %v804_v52 = vpop.trf.xlu1 }
  0xde   : > { %v675_v53 = vpop.trf.xlu0  ;;  %1554 = vmatprep.mubr.msk.f32.mxu1 %vm268_vm0, %v804_v52 }
  0xdf   : > { %1540 = vmatprep.mubr.msk.f32.mxu0 %vm268_vm0, %v675_v53  ;;  %1648 = vmatpush3.bf16.msra.mxu1 %v1645_v49 }
  0xe0   : > { %1640 = vmatpush3.bf16.msra.mxu0 %v1637_v48 }
  0xe1   : > { %v805_v54 = vpop.trf.xlu1 }
  0xe2   : > { %v676_v55 = vpop.trf.xlu0  ;;  %1555 = vmatmul.mubr.msk.f32.gmra.mrb[2].mxu1 %vm268_vm0, %v805_v54 }
  0xe3   : > { %1541 = vmatmul.mubr.msk.f32.gmra.mrb[2].mxu0 %vm268_vm0, %v676_v55  ;;  %v1185_v55 = vmul.f32 %v2192_v0, %v2141_v38 }
  0xe5   : > { %v1060_v56 = vpop.trf.xlu1 }
  0xe6   : > { %v931_v57 = vpop.trf.xlu0  ;;  %1579 = vmatprep.mubr.msk.f32.mxu1 %vm268_vm0, %v1060_v56  ;;  %v1189_v56 = vmul.f32 %v2192_v0, %v2148_v39 }
  0xe7   : > { %1565 = vmatprep.mubr.msk.f32.mxu0 %vm268_vm0, %v931_v57 }
  0xe9   : > { %v1061_v58 = vpop.trf.xlu1 }
  0xea   : > { %v932_v59 = vpop.trf.xlu0  ;;  %1580 = vmatmul.mubr.msk.f32.vlgmr.msra.gmra.mrb[4].mxu1 %vm268_vm0, %v1061_v58 }
  0xeb   : > { %1566 = vmatmul.mubr.msk.f32.vlgmr.msra.gmra.mrb[4].mxu0 %vm268_vm0, %v932_v59 }
  0xed   : > { %v1062_v60 = vpop.trf.xlu1 }
  0xee   : > { %v933_v61 = vpop.trf.xlu0  ;;  %1582 = vmatprep.mubr.msk.f32.mxu1 %vm268_vm0, %v1062_v60 }
  0xef   : > { %1568 = vmatprep.mubr.msk.f32.mxu0 %vm268_vm0, %v933_v61 }
  0xf1   : > { %v1063_v62 = vpop.trf.xlu1 }
  0xf2   : > { %v934_v63 = vpop.trf.xlu0  ;;  %1583 = vmatmul.mubr.msk.f32.gmra.mrb[6].mxu1 %vm268_vm0, %v1063_v62 }
  0xf3   : > { %1569 = vmatmul.mubr.msk.f32.gmra.mrb[6].mxu0 %vm268_vm0, %v934_v63 }
 0x1ad   : > { %v1553_v6 = vpop.f32.mrb[0].mxu1 }
 0x1ae   : > { %v1539_v5 = vpop.f32.mrb[0].mxu0  ;;  %v1196_v8 = vadd.f32 %v1553_v6, %v1180_v2  ;;  %v896_v10 = vpop.f32.mrb[1].mxu1 }
 0x1af   : > { %v1192_v7 = vadd.f32 %v1539_v5, %v1176_v1  ;;  %v767_v9 = vpop.f32.mrb[1].mxu0  ;;  %v1195_v12 = vadd.f32 %v1179_v4, %v896_v10 }
 0x1b0   : > { %v1191_v11 = vadd.f32 %v1175_v3, %v767_v9  ;;  %v1212_v16 = vsub.f32 0.0, %v1196_v8 }
 0x1b1   : > { %v1208_v13 = vsub.f32 0.0, %v1192_v7  ;;  %v1211_v18 = vsub.f32 0.0, %v1195_v12 }
 0x1b2   : > { %v1207_v17 = vsub.f32 0.0, %v1191_v11  ;;  %1228 = vst.msk [vmem:[%s2203_s11 + $0x28] sm:$0xff] %vm268_vm0, %v1212_v16 }
 0x1b3   : > { %1224 = vst.msk [vmem:[%s2203_s11 + $0x8] sm:$0xff] %vm268_vm0, %v1208_v13  ;;  %1227 = vst.msk [vmem:[%s2203_s11 + $0x20] sm:$0xff] %vm268_vm0, %v1211_v18 }
 0x1b4   : > { %1223 = vst.msk [vmem:[%s2203_s11] sm:$0xff] %vm268_vm0, %v1207_v17 }
 0x1b5   : > { %v1556_v22 = vpop.f32.mrb[2].mxu1 }
 0x1b6   : > { %v1542_v21 = vpop.f32.mrb[2].mxu0  ;;  %v1198_v25 = vadd.f32 %v1556_v22, %v1182_v15  ;;  %v906_v27 = vpop.f32.mrb[3].mxu1 }
 0x1b7   : > { %v1194_v24 = vadd.f32 %v1542_v21, %v1178_v14  ;;  %v777_v26 = vpop.f32.mrb[3].mxu0  ;;  %v1197_v30 = vadd.f32 %v1181_v20, %v906_v27 }
 0x1b8   : > { %v1193_v28 = vadd.f32 %v1177_v19, %v777_v26  ;;  %v1214_v33 = vsub.f32 0.0, %v1198_v25 }
 0x1b9   : > { %v1210_v31 = vsub.f32 0.0, %v1194_v24  ;;  %v1213_v41 = vsub.f32 0.0, %v1197_v30 }
 0x1ba   : > { %v1209_v37 = vsub.f32 0.0, %v1193_v28  ;;  %1230 = vst.msk [vmem:[%s2203_s11 + $0x38] sm:$0xff] %vm268_vm0, %v1214_v33 }
 0x1bb   : > { %1226 = vst.msk [vmem:[%s2203_s11 + $0x18] sm:$0xff] %vm268_vm0, %v1210_v31  ;;  %1229 = vst.msk [vmem:[%s2203_s11 + $0x30] sm:$0xff] %vm268_vm0, %v1213_v41 }
 0x1bc   : > { %1225 = vst.msk [vmem:[%s2203_s11 + $0x10] sm:$0xff] %vm268_vm0, %v1209_v37 }
 0x1bd   : > { %v1581_v46 = vpop.f32.mrb[4].mxu1 }
 0x1be   : > { %v1567_v45 = vpop.f32.mrb[4].mxu0  ;;  %v1204_v47 = vadd.f32 %v1581_v46, %v1188_v29  ;;  %v1154_v36 = vpop.f32.mrb[5].mxu1 }
 0x1bf   : > { %v1200_v35 = vadd.f32 %v1567_v45, %v1184_v23  ;;  %v1025_v48 = vpop.f32.mrb[5].mxu0  ;;  %v1203_v50 = vadd.f32 %v1187_v44, %v1154_v36 }
 0x1c0   : > { %v1199_v49 = vadd.f32 %v1183_v43, %v1025_v48  ;;  %v1220_v52 = vsub.f32 0.0, %v1204_v47 }
 0x1c1   : > { %v1216_v51 = vsub.f32 0.0, %v1200_v35  ;;  %v1219_v54 = vsub.f32 0.0, %v1203_v50 }
 0x1c2   : > { %v1215_v53 = vsub.f32 0.0, %v1199_v49  ;;  %1236 = vst.msk [vmem:[%s2203_s11 + $0x68] sm:$0xff] %vm268_vm0, %v1220_v52 }
 0x1c3   : > { %1232 = vst.msk [vmem:[%s2203_s11 + $0x48] sm:$0xff] %vm268_vm0, %v1216_v51  ;;  %1235 = vst.msk [vmem:[%s2203_s11 + $0x60] sm:$0xff] %vm268_vm0, %v1219_v54 }
 0x1c4   : > { %1231 = vst.msk [vmem:[%s2203_s11 + $0x40] sm:$0xff] %vm268_vm0, %v1215_v53 }
 0x1c5   : > { %v1584_v58 = vpop.f32.mrb[6].mxu1 }
 0x1c6   : > { %v1570_v57 = vpop.f32.mrb[6].mxu0  ;;  %v1206_v42 = vadd.f32 %v1584_v58, %v1190_v34  ;;  %v1164_v60 = vpop.f32.mrb[7].mxu1 }
 0x1c7   : > { %v1202_v40 = vadd.f32 %v1570_v57, %v1186_v32  ;;  %v1035_v59 = vpop.f32.mrb[7].mxu0  ;;  %v1205_v62 = vadd.f32 %v1189_v56, %v1164_v60 }
 0x1c8   : > { %v1201_v61 = vadd.f32 %v1185_v55, %v1035_v59  ;;  %v1222_v63 = vsub.f32 0.0, %v1206_v42 }
 0x1c9   : > { %v1218_v38 = vsub.f32 0.0, %v1202_v40  ;;  %v1221_v0 = vsub.f32 0.0, %v1205_v62 }
 0x1ca   : > { %v1217_v39 = vsub.f32 0.0, %v1201_v61  ;;  %1238 = vst.msk [vmem:[%s2203_s11 + $0x78] sm:$0xff] %vm268_vm0, %v1222_v63 }
 0x1cb   : > { %1234 = vst.msk [vmem:[%s2203_s11 + $0x58] sm:$0xff] %vm268_vm0, %v1218_v38  ;;  %1237 = vst.msk [vmem:[%s2203_s11 + $0x70] sm:$0xff] %vm268_vm0, %v1221_v0 }
 0x1cc   : > { %1233 = vst.msk [vmem:[%s2203_s11 + $0x50] sm:$0xff] %vm268_vm0, %v1217_v39 }
 0x1cd   : > { %1794 = shalt.err (!%p1791_p11)
}
 0x1ce   : > { %s1795_s20 = scalar_lea.hbm %s2258_s30, 2048  ;;  %s1799_s23 = scalar_lea.hbm %s2315_s3, 4096 }
 0x1cf   : > { %p1796_p3 = scmp.ne.s32.totalorder %s2258_s30, %s1795_s20  ;;  %p1800_p2 = scmp.lt.u32.totalorder %s2258_s30, %s2315_s3 }
 0x1d0   : > { %p1801_p4 = scmp.lt.u32.totalorder %s1799_s23, %s1795_s20  ;;  %p1803_p13 = scmp.lt.u32.totalorder %s1795_s20, %s2258_s30 }
 0x1d1   : > { %p1797_p8 = pnand %p1796_p3, %p2325_p1 }
 0x1d2   : > { %p1802_p6 = por %p1801_p4, %p1800_p2 }
 0x1d3   : > { %p1798_p0 = pneg %p1797_p8 }
 0x1d4   : > { %p1804_p12 = por %p1803_p13, %p1802_p6 }
 0x1d6   : > { %p1805_p10 = pnand %p1804_p12, %p1798_p0 }
 0x1d8   : > { %1808 = shalt.err (!%p1805_p10)
}
 0x1d9   : > { %s1858_s24 = smov 128   ;;  %s1859_s10 = smov 8  }
 0x1da   : > { %1669 = dma.vmem_to_hbm [thread:$0]  (%p2325_p1), %s2260_s21, 2048, %s2258_s30, %s1240_s0, %s1858_s24, %s1858_s24, %s1859_s10  }
 0x1db PF: > { %s1269_s11 = sand.u32 1, %s1839_s14   ;;  %p2326_p5 = scmp.ne.s32.totalorder %s2321_s26, 0 }
 0x1dc   : > { %p2327_p7 = scmp.ge.s32.totalorder %s1851_s17, 2  ;;  %s1270_s18 = scalar_lea.sflag [#allocation5], %s1269_s11 }
 0x1de   : > { %p1679_p9 = pnand %p2327_p7, %p2326_p5 }
 0x1e0   : > { %1834 = dma.done.wait (!%p1679_p9), %s1270_s18, 2048  }
 0x1e1   : > { %1836 = vsyncadd (!%p1679_p9), %s1270_s18, 4294965248  ;;  %p20_p11 = scmp.ge.s32.totalorder %s1908_s19, 4   ;;  %s2328_s14 = smov %s1843_s15 }
 0x1e2   : > { %s2329_s15 = smov %s1847_s16  ;;  %s2330_s16 = smov %s1920_s22 }
 0x1e3   : > { %s2331_s17 = smov %s1908_s19  ;;  %22 = sbr.rel (!%p20_p11) target bundleno = 9 (0x9), region = 90 }
 0x1ea   :  { %1275 = vsyncpa [#allocation4], 1 }
 0x1eb   :  { %1277 = vsyncpa [#allocation4 + $0x1], 1 }
 0x1ec   :  { %1278 = vsyncpa [#allocation7], 1 }
 0x1ed   :  { %1280 = vsyncpa [#allocation7 + $0x1], 1 }
 0x1ee   :  { %1281 = vsyncpa [#allocation5], 1 }
 0x1ef   :  { %1283 = vsyncpa [#allocation5 + $0x1], 1 }

</bundles_post_ra>
